<compile_context>
chip_gen: v7x
topology: tpu7x:2x2x1
jax: 0.10.0
libtpu: 0.0.40
codegen_flags: <defaults>
</compile_context>

<pallas_src>
import functools

import jax
import jax.numpy as jnp
from jax import lax
from jax.experimental import pallas as pl
from jax.experimental.pallas import tpu as pltpu


def _spatial_gather_kernel(probs_ref, feats_ref, out_ref, sm_scr, acc_scr,
                           *, scale, hw_tile):
    # probs_ref: (1, K, HW)      -- full spatial extent, resident per batch
    # feats_ref: (1, C, HW_TILE) -- pipelined tile of the dominant tensor
    # out_ref:   (1, C, K)
    # sm_scr:    (K, HW)  f32    -- softmax weights, computed once per batch
    # acc_scr:   (C, K)   f32    -- running context accumulator
    hw = pl.program_id(1)

    @pl.when(hw == 0)
    def _init():
        logits = scale * probs_ref[0].astype(jnp.float32)            # (K, HW)
        m = jnp.max(logits, axis=-1, keepdims=True)                  # (K, 1)
        e = jnp.exp(logits - m)
        denom = jnp.sum(e, axis=-1, keepdims=True)                   # (K, 1)
        sm_scr[...] = e * pl.reciprocal(denom, approx=True)          # no divide
        acc_scr[...] = jnp.zeros_like(acc_scr)

    start = hw * hw_tile
    if hw_tile % 128 == 0:
        start = pl.multiple_of(start, 128)
    f_t = feats_ref[0]                                               # (C, T), input dtype
    s_t = sm_scr[:, pl.ds(start, hw_tile)].astype(f_t.dtype)         # (K, T)
    # Contract the HW tile of both operands: (C, T) x (K, T) -> (C, K) on MXU.
    acc_scr[...] += lax.dot_general(
        f_t, s_t,
        dimension_numbers=(((1,), (1,)), ((), ())),
        preferred_element_type=jnp.float32)

    @pl.when(hw == pl.num_programs(1) - 1)
    def _finalize():
        out_ref[0] = acc_scr[...].astype(out_ref.dtype)


def _pick_hw_tile(hw, c, itemsize, target_bytes=8 * 1024 * 1024):
    """Largest multiple-of-128 divisor of hw whose feats tile fits the budget."""
    if hw % 128 != 0:
        return hw                       # fall back to the full (untiled) block
    max_elems = max(128, target_bytes // max(1, c * itemsize))
    best = 128
    d = 128
    while d <= hw:
        if hw % d == 0 and d <= max_elems:
            best = d
        d += 128
    return best


def spatial_gather(feats, probs, scale=1.0, hw_tile=None):
    """feats: (B, C, H, W), probs: (B, K, H, W) -> (B, C, K, 1)."""
    B, C, H, W = feats.shape
    Bp, K, Hp, Wp = probs.shape
    assert (B, H, W) == (Bp, Hp, Wp)
    HW = H * W

    # Glue: flatten spatial only.  feats stays channel-major (no HBM transpose).
    probs_flat = probs.reshape(B, K, HW)      # (B, K, HW)
    feats_flat = feats.reshape(B, C, HW)      # (B, C, HW)

    if hw_tile is None:
        hw_tile = _pick_hw_tile(HW, C, feats.dtype.itemsize)
    assert HW % hw_tile == 0
    n_hw = HW // hw_tile

    out_dtype = jnp.result_type(feats.dtype, probs.dtype)
    kernel = functools.partial(_spatial_gather_kernel,
                               scale=float(scale), hw_tile=hw_tile)

    out = pl.pallas_call(
        kernel,
        out_shape=jax.ShapeDtypeStruct((B, C, K), out_dtype),
        grid_spec=pltpu.PrefetchScalarGridSpec(
            num_scalar_prefetch=0,
            grid=(B, n_hw),
            in_specs=[
                # Whole probs block per batch (small: K x HW); same block index
                # across the hw axis, so it stays resident in VMEM.
                pl.BlockSpec((1, K, HW), lambda b, hw: (b, 0, 0)),
                # Pipelined feats tile: the dominant HBM traffic.
                pl.BlockSpec((1, C, hw_tile), lambda b, hw: (b, 0, hw)),
            ],
            out_specs=pl.BlockSpec((1, C, K), lambda b, hw: (b, 0, 0)),
            scratch_shapes=[
                pltpu.VMEM((K, HW), jnp.float32),    # softmax weights
                pltpu.VMEM((C, K), jnp.float32),     # f32 accumulator
            ]),
        compiler_params=pltpu.CompilerParams(
            dimension_semantics=("parallel", "arbitrary"),
            vmem_limit_bytes=48 * 1024 * 1024),
    )(probs_flat, feats_flat)                 # (B, C, K)

    # torch: matmul(probs, feats).permute(0,2,1).unsqueeze(3) == (B, C, K, 1)
    return out[..., None]


if __name__ == "__main__":
    key = jax.random.PRNGKey(0)
    k1, k2 = jax.random.split(key)

    B, C, K, H, W = 2, 32, 8, 16, 16
    feats = jax.random.normal(k1, (B, C, H, W), dtype=jnp.float32)
    probs = jax.random.normal(k2, (B, K, H, W), dtype=jnp.float32)
    scale = 1.0

    # Pure-JAX reference (same math as the PyTorch forward).
    p = jax.nn.softmax(scale * probs.reshape(B, K, -1), axis=2)
    f = feats.reshape(B, C, -1).transpose(0, 2, 1)
    ref = jnp.einsum("bks,bsc->bkc", p, f).transpose(0, 2, 1)[..., None]

    # 1) auto-picked tile (single HW step at these small shapes)
    out = jax.block_until_ready(spatial_gather(feats, probs, scale=scale))
    assert out.shape == (B, C, K, 1)
    assert jnp.allclose(out, ref, atol=2e-3, rtol=2e-3), \
        float(jnp.max(jnp.abs(out - ref)))

    # 2) forced small tile to exercise the HW-tiled accumulation path
    out_t = jax.block_until_ready(
        spatial_gather(feats, probs, scale=scale, hw_tile=128))
    assert out_t.shape == (B, C, K, 1)
    assert jnp.allclose(out_t, ref, atol=2e-3, rtol=2e-3), \
        float(jnp.max(jnp.abs(out_t - ref)))

    print("KERNEL_OK")
</pallas_src>

<mosaic_0001>
module attributes {stable_mosaic.version = 11 : i64} {
  func.func @_spatial_gather_kernel(%arg0: i32, %arg1: i32, %arg2: memref<1x8x256xf32, #tpu.memory_space<vmem>>, %arg3: memref<1x32x256xf32, #tpu.memory_space<vmem>>, %arg4: memref<1x32x8xf32, #tpu.memory_space<vmem>>, %arg5: memref<8x256xf32, #tpu.memory_space<vmem>>, %arg6: memref<32x8xf32, #tpu.memory_space<vmem>>) attributes {dimension_semantics = [#tpu.dimension_semantics<parallel>, #tpu.dimension_semantics<arbitrary>], iteration_bounds = array<i64: 2, 1>, scalar_prefetch = 0 : i64, scratch_operands = 2 : i64, tpu.core_type = #tpu.core_type<tc>, window_params = [{transform_indices = @transform_0, window_bounds = array<i64: 1, 8, 256>}, {transform_indices = @transform_1, window_bounds = array<i64: 1, 32, 256>}, {transform_indices = @transform_2, window_bounds = array<i64: 1, 32, 8>}]} {
    %c0_i32 = arith.constant 0 : i32
    %0 = arith.cmpi eq, %arg1, %c0_i32 : i32
    %1 = arith.extui %0 : i1 to i32
    %c0_i32_0 = arith.constant 0 : i32
    %2 = arith.cmpi ne, %1, %c0_i32_0 : i32
    scf.if %2 {
      %c0_10 = arith.constant 0 : index
      %c0_11 = arith.constant 0 : index
      %c0_12 = arith.constant 0 : index
      %16 = vector.load %arg2[%c0_10, %c0_11, %c0_12] : memref<1x8x256xf32, #tpu.memory_space<vmem>>, vector<1x8x256xf32>
      %17 = vector.shape_cast %16 : vector<1x8x256xf32> to vector<8x256xf32>
      %cst_13 = arith.constant 1.000000e+00 : f32
      %18 = vector.broadcast %cst_13 : f32 to vector<8x256xf32>
      %19 = arith.mulf %18, %17 : vector<8x256xf32>
      %cst_14 = arith.constant dense<0xFF800000> : vector<8xf32>
      %20 = vector.multi_reduction <maximumf>, %19, %cst_14 [1] : vector<8x256xf32> to vector<8xf32>
      %21 = vector.shape_cast %20 : vector<8xf32> to vector<8x1xf32>
      %22 = vector.broadcast %21 : vector<8x1xf32> to vector<8x256xf32>
      %23 = arith.subf %19, %22 : vector<8x256xf32>
      %24 = math.exp %23 : vector<8x256xf32>
      %cst_15 = arith.constant dense<0.000000e+00> : vector<8xf32>
      %25 = vector.multi_reduction <add>, %24, %cst_15 [1] : vector<8x256xf32> to vector<8xf32>
      %26 = vector.shape_cast %25 : vector<8xf32> to vector<8x1xf32>
      %27 = tpu.reciprocal %26 {approx = true} : vector<8x1xf32> -> vector<8x1xf32>
      %28 = vector.broadcast %27 : vector<8x1xf32> to vector<8x256xf32>
      %29 = arith.mulf %24, %28 : vector<8x256xf32>
      %c0_16 = arith.constant 0 : index
      %c0_17 = arith.constant 0 : index
      %30 = vector.load %arg5[%c0_16, %c0_17] : memref<8x256xf32, #tpu.memory_space<vmem>>, vector<8x256xf32>
      tpu.vector_store %arg5[%c0_16, %c0_17], %29 {strides = array<i32>} : memref<8x256xf32, #tpu.memory_space<vmem>>, vector<8x256xf32>,
      %cst_18 = arith.constant 0.000000e+00 : f32
      %31 = vector.broadcast %cst_18 : f32 to vector<32x8xf32>
      %c0_19 = arith.constant 0 : index
      %c0_20 = arith.constant 0 : index
      %32 = vector.load %arg6[%c0_19, %c0_20] : memref<32x8xf32, #tpu.memory_space<vmem>>, vector<32x8xf32>
      tpu.vector_store %arg6[%c0_19, %c0_20], %31 {strides = array<i32>} : memref<32x8xf32, #tpu.memory_space<vmem>>, vector<32x8xf32>,
    } else {
    }
    %c256_i32 = arith.constant 256 : i32
    %3 = arith.muli %arg1, %c256_i32 : i32
    %4 = tpu.assume_multiple %3, 128 : i32
    %c0 = arith.constant 0 : index
    %c0_1 = arith.constant 0 : index
    %c0_2 = arith.constant 0 : index
    %5 = vector.load %arg3[%c0, %c0_1, %c0_2] : memref<1x32x256xf32, #tpu.memory_space<vmem>>, vector<1x32x256xf32>
    %6 = vector.shape_cast %5 : vector<1x32x256xf32> to vector<32x256xf32>
    %c0_3 = arith.constant 0 : index
    %7 = arith.index_cast %4 : i32 to index
    %8 = vector.load %arg5[%c0_3, %7] : memref<8x256xf32, #tpu.memory_space<vmem>>, vector<8x256xf32>
    %c0_4 = arith.constant 0 : index
    %c0_5 = arith.constant 0 : index
    %9 = vector.load %arg6[%c0_4, %c0_5] : memref<32x8xf32, #tpu.memory_space<vmem>>, vector<32x8xf32>
    %cst = arith.constant dense<0.000000e+00> : vector<32x8xf32>
    %10 = tpu.matmul %6, %8, %cst {dimension_numbers = #tpu.dot_dimension_numbers<[1], [1], [0], [0], [0, 0, 1, 0], [], []>} : vector<32x256xf32>, vector<8x256xf32>, vector<32x8xf32> -> vector<32x8xf32>
    %11 = arith.addf %9, %10 : vector<32x8xf32>
    %c0_6 = arith.constant 0 : index
    %c0_7 = arith.constant 0 : index
    %12 = vector.load %arg6[%c0_6, %c0_7] : memref<32x8xf32, #tpu.memory_space<vmem>>, vector<32x8xf32>
    tpu.vector_store %arg6[%c0_6, %c0_7], %11 {strides = array<i32>} : memref<32x8xf32, #tpu.memory_space<vmem>>, vector<32x8xf32>,
    %c0_i32_8 = arith.constant 0 : i32
    %13 = arith.cmpi eq, %arg1, %c0_i32_8 : i32
    %14 = arith.extui %13 : i1 to i32
    %c0_i32_9 = arith.constant 0 : i32
    %15 = arith.cmpi ne, %14, %c0_i32_9 : i32
    scf.if %15 {
      %c0_10 = arith.constant 0 : index
      %c0_11 = arith.constant 0 : index
      %16 = vector.load %arg6[%c0_10, %c0_11] : memref<32x8xf32, #tpu.memory_space<vmem>>, vector<32x8xf32>
      %c0_12 = arith.constant 0 : index
      %c0_13 = arith.constant 0 : index
      %c0_14 = arith.constant 0 : index
      %17 = vector.load %arg4[%c0_12, %c0_13, %c0_14] : memref<1x32x8xf32, #tpu.memory_space<vmem>>, vector<1x32x8xf32>
      %18 = vector.shape_cast %17 : vector<1x32x8xf32> to vector<32x8xf32>
      %19 = vector.shape_cast %16 : vector<32x8xf32> to vector<1x32x8xf32>
      tpu.vector_store %arg4[%c0_12, %c0_13, %c0_14], %19 {strides = array<i32>} : memref<1x32x8xf32, #tpu.memory_space<vmem>>, vector<1x32x8xf32>,
    } else {
    }
    return
  }
  func.func @transform_0(%arg0: i32, %arg1: i32) -> (i32, i32, i32) {
    %c0_i32 = arith.constant 0 : i32
    %c0_i32_0 = arith.constant 0 : i32
    %c0_i32_1 = arith.constant 0 : i32
    return %arg0, %c0_i32, %c0_i32_0 : i32, i32, i32
  }
  func.func @transform_1(%arg0: i32, %arg1: i32) -> (i32, i32, i32) {
    %c0_i32 = arith.constant 0 : i32
    %c0_i32_0 = arith.constant 0 : i32
    return %arg0, %c0_i32, %arg1 : i32, i32, i32
  }
  func.func @transform_2(%arg0: i32, %arg1: i32) -> (i32, i32, i32) {
    %c0_i32 = arith.constant 0 : i32
    %c0_i32_0 = arith.constant 0 : i32
    %c0_i32_1 = arith.constant 0 : i32
    return %arg0, %c0_i32, %c0_i32_0 : i32, i32, i32
  }
}

</mosaic_0001>

<bundles_post_ra>
// kernel: tpu_custom_call.1
= control target key start
LH: loop header
LB: loop body
LE: loop exit
PB: predicated region body
PF: predicated region fallthrough
CT: control target
= control target key end

     0   :  { %7 = vsyncpa [#allocation5], 0  ;;  %s897_s0 = inlined_call_operand.hbm [shape: f32[2,8,256], index: 0, kind: input, shape index: {}]   ;;  %s898_s1 = inlined_call_operand.hbm [shape: f32[2,32,256], index: 1, kind: input, shape index: {}]   ;;  %s899_s2 = inlined_call_operand.vmem [shape: f32[2,32,8], index: 2, kind: output, shape index: {}]  }
   0x1   :  { %9 = vsyncpa [#allocation5 + $0x1], 0 }
   0x2   :  { %10 = vsyncpa [#allocation7], 0 }
   0x3   :  { %12 = vsyncpa [#allocation7 + $0x1], 0  ;;  %s701_s9 = smov 0   ;;  %s703_s10 = smov 0  }
   0x4   :  { %s705_s11 = smov 0   ;;  %s707_s12 = smov 0  }
   0x5   :  { %s709_s13 = smov 0   ;;  %s711_s14 = smov 0  }
   0x6 LB: > { %s474_s15 = sadd.s32 4294967295, %s679_s14   ;;  %s30_s16 = sadd.s32 1, %s675_s13  ;;  %s679_s14 = sphi %s711_s14, %s18_s14   ;;  %s675_s13 = sphi %s709_s13, %s912_s13   ;;  %s671_s12 = sphi %s707_s12, %s911_s12   ;;  %s667_s11 = sphi %s705_s11, %s910_s11   ;;  %s663_s10 = sphi %s703_s10, %s909_s10   ;;  %s659_s9 = sphi %s701_s9, %s908_s9  }
   0x7   : > { %p32_p0 = scmp.ge.s32.totalorder %s30_s16, 2  ;;  %s37_s17 = sadd.s32 1, %s667_s11 }
   0x8   : > { %p44_p1 = scmp.ne.s32.totalorder %s667_s11, %s663_s10  ;;  %p45_p2 = scmp.eq.s32.totalorder %s679_s14, 0 }
   0x9   : > { %s914_s16 = smov (%p32_p0, %s30_s16), 0  ;;  %p50_p4 = scmp.ne.s32.totalorder %s663_s10, %s659_s9 }
   0xa   : > { %p737_p3 = por %p45_p2, %p44_p1  ;;  %s34_s19 = ssub.s32 %s675_s13, %s914_s16 }
   0xb   : > { %p51_p5 = scmp.eq.s32.totalorder %s474_s15, 0  ;;  %p35_p6 = scmp.eq.s32.totalorder %s34_s19, 0 }
   0xc   : > { %p507_p8 = scmp.lt.s32.totalorder %s679_s14, 2  ;;  %s753_s22 = sand.u32 1, %s667_s11  }
   0xd   : > { %p744_p7 = por %p51_p5, %p50_p4  ;;  %s491_s23 = sshll.u32 %s675_s13, 8 }
   0xe   : > { %s750_s21 = scalar_select %p35_p6, %s667_s11, %s37_s17  }
   0xf   : > { %s902_s20 = scalar_select %p744_p7, 1, 0 }
  0x10   : > { %s478_s24 = sshll.u32 %s753_s22, 4  ;;  %s760_s27 = scalar_lea.hbm %s897_s0, %s491_s23 }
  0x11   : > { %s132_s28 = scalar_lea.vmem [#allocation4], %s478_s24  ;;  %p764_p9 = pnand %p507_p8, %p737_p3 }
  0x12   : > { %s140_s29 = sshll.u32 %s132_s28, 4  ;;  %s129_s3 = scalar_lea.sflag [#allocation5], %s753_s22  ;;  %s768_s29 = int_to_ptr.vmem [resolvable:$true] %s140_s29 }
  0x13   : > { %s565_s4 = scalar_lea.hbm %s760_s27, 256  ;;  %p567_p13 = pneg %p764_p9 }
  0x14   : > { %p566_p12 = scmp.ne.s32.totalorder %s760_s27, %s565_s4  ;;  %s570_s7 = scalar_lea.hbm %s897_s0, 512 }
  0x15   : > { %p571_p2 = scmp.lt.u32.totalorder %s760_s27, %s897_s0  ;;  %p572_p3 = scmp.lt.u32.totalorder %s570_s7, %s565_s4 }
  0x16   : > { %p568_p0 = pnand %p567_p13, %p566_p12  ;;  %p574_p5 = scmp.lt.u32.totalorder %s565_s4, %s760_s27 }
  0x17   : > { %p573_p4 = por %p572_p3, %p571_p2 }
  0x18   : > { %p569_p1 = pneg %p568_p0 }
  0x19   : > { %p575_p6 = por %p574_p5, %p573_p4 }
  0x1b   : > { %p576_p8 = pnand %p575_p6, %p569_p1 }
  0x1d   : > { %579 = shalt.err (!%p576_p8)
}
  0x1e   : > { %s580_s15 = scalar_lea.vmem %s768_s29, 256  ;;  %s681_s17 = smov [#allocation4]  }
  0x1f   : > { %p581_p12 = scmp.ne.s32.totalorder %s768_s29, %s580_s15  ;;  %s585_s18 = sshll.u32 %s681_s17, 4  ;;  %s586_s18 = int_to_ptr.vmem [resolvable:$false] %s585_s18 }
  0x20   : > { %s587_s19 = scalar_lea.vmem %s586_s18, 512  ;;  %p588_p11 = scmp.lt.s32.totalorder %s768_s29, %s586_s18 }
  0x21   : > { %p583_p0 = pnand %p581_p12, %p567_p13  ;;  %p589_p2 = scmp.lt.s32.totalorder %s587_s19, %s580_s15 }
  0x23   : > { %p584_p10 = pneg %p583_p0  ;;  %p590_p3 = por %p589_p2, %p588_p11 }
  0x25   : > { %p591_p4 = pnand %p590_p3, %p584_p10 }
  0x27   : > { %594 = shalt.err (!%p591_p4)
}
  0x28   : > { %503 = dma.hbm_to_vmem [thread:$0]  (!%p764_p9), %s760_s27, 256, %s768_s29, %s129_s3  }
  0x29   : > { %p904_p1 = scmp.lt.s32.totalorder %s679_s14, 3  ;;  %p905_p5 = scmp.ge.s32.totalorder %s679_s14, 1 }
  0x2a   : > { %s481_s24 = sshll.u32 %s753_s22, 6  ;;  %s492_s25 = sshll.u32 %s675_s13, 10 }
  0x2b   : > { %p802_p6 = pnand %p905_p5, %p904_p1  ;;  %s811_s4 = scalar_lea.hbm %s898_s1, %s492_s25 }
  0x2c   : > { %s151_s5 = scalar_lea.vmem [#allocation6], %s481_s24  ;;  %s148_s27 = scalar_lea.sflag [#allocation7], %s753_s22 }
  0x2d   : > { %s160_s6 = sshll.u32 %s151_s5, 4  ;;  %s595_s29 = scalar_lea.hbm %s811_s4, 1024  ;;  %s813_s6 = int_to_ptr.vmem [resolvable:$true] %s160_s6 }
  0x2e   : > { %p596_p10 = scmp.ne.s32.totalorder %s811_s4, %s595_s29  ;;  %s600_s8 = scalar_lea.hbm %s898_s1, 2048 }
  0x2f   : > { %p601_p12 = scmp.lt.u32.totalorder %s811_s4, %s898_s1  ;;  %p602_p0 = scmp.lt.u32.totalorder %s600_s8, %s595_s29 }
  0x30   : > { %p598_p11 = pnand %p596_p10, %p567_p13  ;;  %p604_p3 = scmp.lt.u32.totalorder %s595_s29, %s811_s4 }
  0x31   : > { %p603_p2 = por %p602_p0, %p601_p12 }
  0x32   : > { %p599_p8 = pneg %p598_p11 }
  0x33   : > { %p605_p4 = por %p604_p3, %p603_p2 }
  0x35   : > { %p606_p1 = pnand %p605_p4, %p599_p8 }
  0x37   : > { %609 = shalt.err (!%p606_p1)
}
  0x38   : > { %s610_s17 = scalar_lea.vmem %s813_s6, 1024  ;;  %s682_s18 = smov [#allocation6]  }
  0x39   : > { %p611_p5 = scmp.ne.s32.totalorder %s813_s6, %s610_s17  ;;  %s615_s19 = sshll.u32 %s682_s18, 4  ;;  %s616_s19 = int_to_ptr.vmem [resolvable:$false] %s615_s19 }
  0x3a   : > { %s617_s24 = scalar_lea.vmem %s616_s19, 2048  ;;  %p618_p7 = scmp.lt.s32.totalorder %s813_s6, %s616_s19 }
  0x3b   : > { %p613_p10 = pnand %p611_p5, %p567_p13  ;;  %p619_p12 = scmp.lt.s32.totalorder %s617_s24, %s610_s17 }
  0x3d   : > { %p614_p11 = pneg %p613_p10  ;;  %p620_p0 = por %p619_p12, %p618_p7 }
  0x3f   : > { %p621_p2 = pnand %p620_p0, %p614_p11 }
  0x41   : > { %624 = shalt.err (!%p621_p2)
}
  0x42   : > { %s683_s25 = smov 256   ;;  %s684_s26 = smov 16  }
  0x43   : > { %506 = dma.hbm_to_vmem [thread:$0]  (!%p764_p9), %s811_s4, 1024, %s813_s6, %s148_s27, %s683_s25, %s683_s25, %s684_s26  }
  0x44   : > { %172 = sbr.rel (%p802_p6) target bundleno = 628 (0x274), region = 28  ;;  %s174_s28 = sand.u32 (!%p802_p6), 1, %s663_s10  }
  0x45   : > { %s485_s5 = sshll.u32 (!%p802_p6), %s174_s28, 4  ;;  %s175_s29 = scalar_lea.sflag (!%p802_p6), [#allocation5], %s174_s28 }
  0x46   : > { %s178_s3 = scalar_lea.vmem (!%p802_p6), [#allocation4], %s485_s5  ;;  %p907_p7 = scmp.ne.s32.totalorder (!%p802_p6), %s902_s20, 0 }
  0x4b   : > { %650 = dma.done.wait (%p907_p7), %s175_s29, 256  }
  0x4c   : > { %652 = vsyncadd (%p907_p7), %s175_s29, 4294967040  ;;  %s486_s7 = sshll.u32 %s174_s28, 6  ;;  %s184_s8 = scalar_lea.sflag [#allocation7], %s174_s28 }
  0x4d   : > { %s848_s30 = scalar_lea.vmem [#allocation6], %s486_s7 }
  0x4e   : > { %654 = dma.done.wait (%p907_p7), %s184_s8, 1024  }
  0x4f   : > { %656 = vsyncadd (%p907_p7), %s184_s8, 4294966272  ;;  %v223_v0 = vld [vmem:[%s178_s3] sm:$0xff]  ;;  %v224_v1 = vld [vmem:[%s178_s3 + $0x8] sm:$0xff]  ;;  %vm242_vm0 = vcmask 64512   ;;  %v685_v13 = vmov 0.0   ;;  %p214_p9 = scmp.lt.s32.totalorder %s671_s12, 1 }
  0x50   : > { %v225_v2 = vmax.f32 %v223_v0, %v224_v1  ;;  %v249_v11 = vld [vmem:[%s848_s30 + $0x8] sm:$0xff]  ;;  %243 = vst.msk [vmem:[#allocation3] sm:$0xff] %vm242_vm0, %v685_v13  ;;  %244 = vst.msk [vmem:[#allocation3 + $0x8] sm:$0xff] %vm242_vm0, %v685_v13  ;;  %v248_v18 = vld [vmem:[%s848_s30] sm:$0xff] }
  0x51   : > { %v253_v12 = vld [vmem:[%s848_s30 + $0x28] sm:$0xff]  ;;  %330 = vmatprep.mubr.f32.mxu0 %v249_v11  ;;  %245 = vst.msk [vmem:[#allocation3 + $0x10] sm:$0xff] %vm242_vm0, %v685_v13  ;;  %246 = vst.msk [vmem:[#allocation3 + $0x18] sm:$0xff] %vm242_vm0, %v685_v13  ;;  %v252_v19 = vld [vmem:[%s848_s30 + $0x20] sm:$0xff]  ;;  %s916_s12 = smov (!%p214_p9, %s671_s12), 1 }
  0x52   : > { %226 = vmax.xlane.f32.xlu0 %v225_v2  ;;  %340 = vmatprep.mubr.f32.mxu1 %v253_v12  ;;  %v251_v20 = vld [vmem:[%s848_s30 + $0x18] sm:$0xff]  ;;  %v250_v22 = vld [vmem:[%s848_s30 + $0x10] sm:$0xff]  ;;  %s493_s20 = sshll.u32 %s916_s12, 5 }
  0x53   : > { %v255_v21 = vld [vmem:[%s848_s30 + $0x38] sm:$0xff]  ;;  %v254_v23 = vld [vmem:[%s848_s30 + $0x30] sm:$0xff]  ;;  %s218_s4 = scalar_lea.vmem %s899_s2, %s493_s20 }
  0x57   : > { %v262_v24 = vld [vmem:[#allocation3] sm:$0xff]  ;;  %v263_v32 = vld [vmem:[#allocation3 + $0x8] sm:$0xff] }
  0x58   : > { %v264_v25 = vld [vmem:[#allocation3 + $0x10] sm:$0xff]  ;;  %v265_v33 = vld [vmem:[#allocation3 + $0x18] sm:$0xff] }
  0xdf   : > { %v227_v3 = vpop.xlane.xlu0 %226 }
  0xe0   : > { %v228_v4 = vsub.f32 %v223_v0, %v227_v3  ;;  %v229_v5 = vsub.f32 %v224_v1, %v227_v3 }
  0xe2   : > { %v230_v6 = vmul.f32 1.442695, %v228_v4  ;;  %v232_v7 = vmul.f32 1.442695, %v229_v5 }
  0xe4   : > { %559 = vpow2.f32 %v230_v6 }
  0xe5   : > { %561 = vpow2.f32 %v232_v7 }
  0xee   : > { %v560_v8 = vpop.eup %559 }
  0xef   : > { %v562_v9 = vpop.eup %561 }
  0xf0   : > { %v234_v10 = vadd.f32 %v562_v9, %v560_v8 }
  0xf2   : > { %235 = vadd.xlane.f32.xlu0 %v234_v10 }
 0x17f   : > { %v236_v14 = vpop.xlane.xlu0 %235 }
 0x180   : > { %563 = vrcp.f32 %v236_v14 }
 0x18a   : > { %v564_v15 = vpop.eup %563 }
 0x18b   : > { %v239_v16 = vmul.f32 %v564_v15, %v562_v9  ;;  %v238_v17 = vmul.f32 %v564_v15, %v560_v8 }
 0x18d   : > { %266 = vmatprep.subr.mxu0 %v239_v16  ;;  %494 = vmatprep.subr.mxu1 %v239_v16 }
 0x18e   : > { %267 = vmatpush1.xpose.msra.mxu0 %v238_v17  ;;  %495 = vmatpush1.xpose.msra.mxu1 %v238_v17 }
 0x191   : > { %331 = vmatmul.mubr.f32.vlgmr.msra.gmra.mrb[0].mxu0 %v248_v18  ;;  %341 = vmatmul.mubr.f32.vlgmr.msra.gmra.mrb[0].mxu1 %v252_v19 }
 0x192   : > { %335 = vmatprep.mubr.f32.mxu0 %v251_v20  ;;  %345 = vmatprep.mubr.f32.mxu1 %v255_v21 }
 0x195   : > { %336 = vmatmul.mubr.f32.gmra.mrb[2].mxu0 %v250_v22  ;;  %346 = vmatmul.mubr.f32.gmra.mrb[2].mxu1 %v254_v23 }
 0x264   : > { %v332_v26 = vpop.f32.mrb[0].mxu0  ;;  %v342_v27 = vpop.f32.mrb[0].mxu1 }
 0x265   : > { %v351_v28 = vadd.f32 %v332_v26, %v262_v24  ;;  %v353_v29 = vadd.f32 %v342_v27, %v264_v25  ;;  %v334_v30 = vpop.f32.mrb[1].mxu0  ;;  %v344_v31 = vpop.f32.mrb[1].mxu1 }
 0x267   : > { %356 = vst.msk [vmem:[#allocation3] sm:$0xff] %vm242_vm0, %v351_v28  ;;  %358 = vst.msk [vmem:[#allocation3 + $0x10] sm:$0xff] %vm242_vm0, %v353_v29 }
 0x268   : > { %v337_v34 = vpop.f32.mrb[2].mxu0  ;;  %v347_v35 = vpop.f32.mrb[2].mxu1 }
 0x269   : > { %v352_v36 = vadd.f32 %v337_v34, %v263_v32  ;;  %v354_v37 = vadd.f32 %v347_v35, %v265_v33  ;;  %v339_v38 = vpop.f32.mrb[3].mxu0  ;;  %v349_v39 = vpop.f32.mrb[3].mxu1 }
 0x26b   : > { %357 = vst.msk [vmem:[#allocation3 + $0x8] sm:$0xff] %vm242_vm0, %v352_v36  ;;  %359 = vst.msk [vmem:[#allocation3 + $0x18] sm:$0xff] %vm242_vm0, %v354_v37 }
 0x26e   : > { %v363_v40 = vld [vmem:[#allocation3] sm:$0xff]  ;;  %v365_v41 = vld [vmem:[#allocation3 + $0x10] sm:$0xff] }
 0x26f   : > { %367 = vst.msk [vmem:[%s218_s4] sm:$0xff] %vm242_vm0, %v363_v40  ;;  %369 = vst.msk [vmem:[%s218_s4 + $0x10] sm:$0xff] %vm242_vm0, %v365_v41 }
 0x272   : > { %v364_v42 = vld [vmem:[#allocation3 + $0x8] sm:$0xff]  ;;  %v366_v43 = vld [vmem:[#allocation3 + $0x18] sm:$0xff] }
 0x273   : > { %368 = vst.msk [vmem:[%s218_s4 + $0x8] sm:$0xff] %vm242_vm0, %v364_v42  ;;  %370 = vst.msk [vmem:[%s218_s4 + $0x18] sm:$0xff] %vm242_vm0, %v366_v43 }
 0x274 PF: > { %s18_s14 = sadd.s32 1, %s679_s14   ;;  %s908_s9 = smov %s663_s10 }
 0x275   : > { %p15_p13 = scmp.ge.s32.totalorder %s18_s14, 4   ;;  %s909_s10 = smov %s667_s11 }
 0x276   : > { %s910_s11 = smov %s750_s21  ;;  %s911_s12 = smov %s675_s13 }
 0x277   : > { %s912_s13 = smov %s914_s16  ;;  %17 = sbr.rel (!%p15_p13) target bundleno = 6 (0x6), region = 90 }
 0x27e   :  { %392 = vsyncpa [#allocation5], 1 }
 0x27f   :  { %394 = vsyncpa [#allocation5 + $0x1], 1 }
 0x280   :  { %395 = vsyncpa [#allocation7], 1 }
 0x281   :  { %397 = vsyncpa [#allocation7 + $0x1], 1 }

</bundles_post_ra>
